<compile_context>
chip_gen: v6e
topology: v6e:2x2x1
jax: 0.10.0
libtpu: 0.0.40
codegen_flags: <defaults>
</compile_context>

<pallas_src>
import functools

import jax
import jax.numpy as jnp
from jax import lax
from jax.experimental import pallas as pl
from jax.experimental.pallas import tpu as pltpu

danCells = 10
mbonCells = 10


# --------------------------------------------------------------------------
# Single-step forward (matches DANCell.forward)
# --------------------------------------------------------------------------
def _dan_cell_kernel(mbon_ref, state_ref, ctx_ref, wm_ref, wd_ref,
                     wc_ref, bias_ref, out_ref, *, dt_tau):
    state = state_ref[...]
    pre = (jnp.dot(mbon_ref[...], wm_ref[...],
                   preferred_element_type=jnp.float32)
           + jnp.dot(state, wd_ref[...],
                     preferred_element_type=jnp.float32)
           + ctx_ref[...] * wc_ref[...]          # (TB,1)*(1,D) -> (TB,D)
           + bias_ref[...])                       # (1,D) broadcast
    act = jnp.maximum(pre, 0.0)                   # ReLU
    out_ref[...] = (state * (1.0 - dt_tau) + dt_tau * act).astype(out_ref.dtype)


def dan_cell_forward(state, mbon_inputs, context,
                     mbon_weight, dan_weight, context_weight, bias,
                     *, tau, dt, batch_tile=4096):
    """One DANCell.forward step.  Batch is tiled over the grid; ragged tails
    are handled by Pallas OOB masking (no wrapper-side pad/concat copies)."""
    B = state.shape[0]
    dt_tau = float(dt) / float(tau)

    TB = min(batch_tile, B)
    nb = -(-B // TB)

    # Only raise the scoped-VMEM limit when the big tile is actually in play
    # (4 lane-padded (TB,128) f32 buffers, double-buffered ~= 16 MiB @ TB=4096).
    vmem_limit = 48 * 1024 * 1024 if TB >= 2048 else None

    kernel = functools.partial(_dan_cell_kernel, dt_tau=dt_tau)

    out = pl.pallas_call(
        kernel,
        out_shape=jax.ShapeDtypeStruct((B, danCells), jnp.float32),
        grid=(nb,),
        in_specs=[
            pl.BlockSpec((TB, mbonCells), lambda i: (i, 0)),     # mbon_inputs
            pl.BlockSpec((TB, danCells), lambda i: (i, 0)),      # state
            pl.BlockSpec((TB, 1), lambda i: (i, 0)),             # context
            pl.BlockSpec((mbonCells, danCells), lambda i: (0, 0)),
            pl.BlockSpec((danCells, danCells), lambda i: (0, 0)),
            pl.BlockSpec((1, danCells), lambda i: (0, 0)),
            pl.BlockSpec((1, danCells), lambda i: (0, 0)),
        ],
        out_specs=pl.BlockSpec((TB, danCells), lambda i: (i, 0)),
        compiler_params=pltpu.CompilerParams(
            dimension_semantics=("parallel",),    # shards batch on v7x 2-TC
            vmem_limit_bytes=vmem_limit),
    )(mbon_inputs.astype(jnp.float32), state.astype(jnp.float32),
      context.astype(jnp.float32), mbon_weight.astype(jnp.float32),
      dan_weight.astype(jnp.float32), context_weight.astype(jnp.float32),
      bias.reshape(1, danCells).astype(jnp.float32))
    return out


# --------------------------------------------------------------------------
# Recurrent rollout: T sequential steps, time-chunked.
#   grid = (T/TC,), each grid step runs TC steps with an in-kernel fori_loop.
#   State is carried in vregs inside the chunk (loop carry); a tiny VMEM
#   scratch carries it across chunks.  mbon/ctx chunks stream straight from
#   HBM; the drive is computed in-kernel (never materialized in HBM).
# --------------------------------------------------------------------------
def _dan_rollout_kernel(state0_ref, mbon_ref, ctx_ref, wm_ref, wd_ref,
                        wc_ref, bias_ref, out_ref, state_sc,
                        *, dt_tau, unroll):
    c = pl.program_id(0)

    @pl.when(c == 0)
    def _():
        state_sc[...] = state0_ref[...].astype(jnp.float32)

    tc = mbon_ref.shape[0]
    wm = wm_ref[...]
    wd = wd_ref[...]
    wc = wc_ref[...]
    bias = bias_ref[...]

    def step(i, st):
        # State-independent drive for this step (off the serial dep chain,
        # overlaps with the recurrent matmul latency).
        drive = (jnp.dot(mbon_ref[i], wm, preferred_element_type=jnp.float32)
                 + ctx_ref[i] * wc + bias)
        pre = drive + jnp.dot(st, wd, preferred_element_type=jnp.float32)
        new_st = st * (1.0 - dt_tau) + dt_tau * jnp.maximum(pre, 0.0)
        out_ref[i] = new_st.astype(out_ref.dtype)
        return new_st

    final = lax.fori_loop(0, tc, step, state_sc[...], unroll=unroll)
    state_sc[...] = final            # cross-chunk carry


def dan_cell_rollout(state0, mbon_seq, ctx_seq,
                     mbon_weight, dan_weight, context_weight, bias,
                     *, tau, dt, time_chunk=256):
    T, B, _ = mbon_seq.shape
    dt_tau = float(dt) / float(tau)

    TC = min(time_chunk, T)
    Tp = ((T + TC - 1) // TC) * TC
    if Tp != T:
        # Trailing zero-padded steps run after all real steps, so real outputs
        # are unaffected; padded outputs are sliced off below.
        mbon_seq = jnp.pad(mbon_seq, ((0, Tp - T), (0, 0), (0, 0)))
        ctx_seq = jnp.pad(ctx_seq, ((0, Tp - T), (0, 0), (0, 0)))
    n_chunks = Tp // TC
    unroll = 8 if TC % 8 == 0 else 1

    kernel = functools.partial(_dan_rollout_kernel, dt_tau=dt_tau,
                               unroll=unroll)

    out = pl.pallas_call(
        kernel,
        out_shape=jax.ShapeDtypeStruct((Tp, B, danCells), jnp.float32),
        grid=(n_chunks,),
        in_specs=[
            pl.BlockSpec((B, danCells), lambda c: (0, 0)),         # state0
            pl.BlockSpec((TC, B, mbonCells), lambda c: (c, 0, 0)),  # mbon chunk
            pl.BlockSpec((TC, B, 1), lambda c: (c, 0, 0)),          # ctx chunk
            pl.BlockSpec((mbonCells, danCells), lambda c: (0, 0)),
            pl.BlockSpec((danCells, danCells), lambda c: (0, 0)),
            pl.BlockSpec((1, danCells), lambda c: (0, 0)),
            pl.BlockSpec((1, danCells), lambda c: (0, 0)),
        ],
        out_specs=pl.BlockSpec((TC, B, danCells), lambda c: (c, 0, 0)),
        scratch_shapes=[pltpu.VMEM((B, danCells), jnp.float32)],    # carry
        compiler_params=pltpu.CompilerParams(
            dimension_semantics=("arbitrary",)),   # sequential recurrence
    )(state0.astype(jnp.float32), mbon_seq.astype(jnp.float32),
      ctx_seq.astype(jnp.float32), mbon_weight.astype(jnp.float32),
      dan_weight.astype(jnp.float32), context_weight.astype(jnp.float32),
      bias.reshape(1, danCells).astype(jnp.float32))

    return out[:T] if Tp != T else out


# --------------------------------------------------------------------------
# Pure-JAX reference (mirrors the PyTorch forward)
# --------------------------------------------------------------------------
def dan_cell_reference(state, mbon_inputs, context,
                       mbon_weight, dan_weight, context_weight, bias,
                       *, tau, dt):
    dt_tau = dt / tau
    mbon_value = mbon_inputs @ mbon_weight
    context_value = context @ context_weight
    dan_recurrent = state @ dan_weight
    act = jnp.maximum(dan_recurrent + mbon_value + context_value + bias, 0.0)
    return state * (1.0 - dt_tau) + dt_tau * act


if __name__ == "__main__":
    key = jax.random.PRNGKey(0)
    k = jax.random.split(key, 12)

    B = 2
    T = 8
    tau, RC, dt = 5.0, 1.0, 0.5   # RC only used by lowPass (not in forward)

    # Deterministic "normal(0, 0.5)" initialization matching __init__ shapes.
    mbon_weight = 0.5 * jax.random.normal(k[0], (mbonCells, danCells), jnp.float32)
    dan_weight = 0.5 * jax.random.normal(k[1], (danCells, danCells), jnp.float32)
    context_weight = 0.5 * jax.random.normal(k[2], (1, danCells), jnp.float32)
    bias = 0.5 * jax.random.normal(k[3], (danCells,), jnp.float32)

    state = jax.random.normal(k[4], (B, danCells), jnp.float32)
    mbon_inputs = jax.random.normal(k[5], (B, mbonCells), jnp.float32)
    context = jax.random.normal(k[6], (B, 1), jnp.float32)

    # ---- single-step forward (the module's forward()) ----
    out = dan_cell_forward(state, mbon_inputs, context,
                           mbon_weight, dan_weight, context_weight, bias,
                           tau=tau, dt=dt)
    out = jax.block_until_ready(out)
    ref = dan_cell_reference(state, mbon_inputs, context,
                             mbon_weight, dan_weight, context_weight, bias,
                             tau=tau, dt=dt)
    assert out.shape == (B, danCells)
    assert jnp.allclose(out, ref, atol=1e-4, rtol=1e-4)

    # ---- tiled + ragged batch forward (exercises the masked-tail path) ----
    Bb = 20
    state_b = jax.random.normal(k[7], (Bb, danCells), jnp.float32)
    mbon_b = jax.random.normal(k[8], (Bb, mbonCells), jnp.float32)
    ctx_b = jax.random.normal(k[9], (Bb, 1), jnp.float32)
    out_b = dan_cell_forward(state_b, mbon_b, ctx_b,
                             mbon_weight, dan_weight, context_weight, bias,
                             tau=tau, dt=dt, batch_tile=8)
    out_b = jax.block_until_ready(out_b)
    ref_b = dan_cell_reference(state_b, mbon_b, ctx_b,
                               mbon_weight, dan_weight, context_weight, bias,
                               tau=tau, dt=dt)
    assert out_b.shape == (Bb, danCells)
    assert jnp.allclose(out_b, ref_b, atol=1e-4, rtol=1e-4)

    # ---- recurrent rollout: chunked time loop, state carried in vregs ----
    mbon_seq = jax.random.normal(k[10], (T, B, mbonCells), jnp.float32)
    ctx_seq = jax.random.normal(k[11], (T, B, 1), jnp.float32)

    s = state
    ref_steps = []
    for t in range(T):
        s = dan_cell_reference(s, mbon_seq[t], ctx_seq[t],
                               mbon_weight, dan_weight, context_weight, bias,
                               tau=tau, dt=dt)
        ref_steps.append(s)
    ref_traj = jnp.stack(ref_steps, axis=0)

    # Single chunk (default TC).
    traj = dan_cell_rollout(state, mbon_seq, ctx_seq,
                            mbon_weight, dan_weight, context_weight, bias,
                            tau=tau, dt=dt)
    traj = jax.block_until_ready(traj)
    assert traj.shape == (T, B, danCells)
    assert jnp.allclose(traj, ref_traj, atol=1e-4, rtol=1e-4)

    # Multi-chunk with ragged time padding (exercises cross-chunk carry).
    traj2 = dan_cell_rollout(state, mbon_seq, ctx_seq,
                             mbon_weight, dan_weight, context_weight, bias,
                             tau=tau, dt=dt, time_chunk=3)
    traj2 = jax.block_until_ready(traj2)
    assert traj2.shape == (T, B, danCells)
    assert jnp.allclose(traj2, ref_traj, atol=1e-4, rtol=1e-4)

    # TODO(synk): lowPass() is a separate trivial elementwise method, not part
    # of forward(); it is not implemented as a kernel here.
    print("KERNEL_OK")
</pallas_src>

<mosaic_0001>
module attributes {stable_mosaic.version = 11 : i64} {
  func.func @_dan_cell_kernel(%arg0: i32, %arg1: memref<2x10xf32, #tpu.memory_space<vmem>>, %arg2: memref<2x10xf32, #tpu.memory_space<vmem>>, %arg3: memref<2x1xf32, #tpu.memory_space<vmem>>, %arg4: memref<10x10xf32, #tpu.memory_space<vmem>>, %arg5: memref<10x10xf32, #tpu.memory_space<vmem>>, %arg6: memref<1x10xf32, #tpu.memory_space<vmem>>, %arg7: memref<1x10xf32, #tpu.memory_space<vmem>>, %arg8: memref<2x10xf32, #tpu.memory_space<vmem>>) attributes {dimension_semantics = [#tpu.dimension_semantics<parallel>], iteration_bounds = array<i64: 1>, scalar_prefetch = 0 : i64, scratch_operands = 0 : i64, tpu.core_type = #tpu.core_type<tc>, window_params = [{transform_indices = @transform_0, window_bounds = array<i64: 2, 10>}, {transform_indices = @transform_1, window_bounds = array<i64: 2, 10>}, {transform_indices = @transform_2, window_bounds = array<i64: 2, 1>}, {pipeline_mode = #tpu.pipeline_mode<synchronous>, transform_indices = @transform_3, window_bounds = array<i64: 10, 10>}, {pipeline_mode = #tpu.pipeline_mode<synchronous>, transform_indices = @transform_4, window_bounds = array<i64: 10, 10>}, {pipeline_mode = #tpu.pipeline_mode<synchronous>, transform_indices = @transform_5, window_bounds = array<i64: 1, 10>}, {pipeline_mode = #tpu.pipeline_mode<synchronous>, transform_indices = @transform_6, window_bounds = array<i64: 1, 10>}, {transform_indices = @transform_7, window_bounds = array<i64: 2, 10>}]} {
    %c0 = arith.constant 0 : index
    %c0_0 = arith.constant 0 : index
    %0 = vector.load %arg2[%c0, %c0_0] : memref<2x10xf32, #tpu.memory_space<vmem>>, vector<2x10xf32>
    %c0_1 = arith.constant 0 : index
    %c0_2 = arith.constant 0 : index
    %1 = vector.load %arg1[%c0_1, %c0_2] : memref<2x10xf32, #tpu.memory_space<vmem>>, vector<2x10xf32>
    %c0_3 = arith.constant 0 : index
    %c0_4 = arith.constant 0 : index
    %2 = vector.load %arg4[%c0_3, %c0_4] : memref<10x10xf32, #tpu.memory_space<vmem>>, vector<10x10xf32>
    %cst = arith.constant dense<0.000000e+00> : vector<2x10xf32>
    %3 = tpu.matmul %1, %2, %cst {dimension_numbers = #tpu.dot_dimension_numbers<[1], [0], [0], [1], [0, 0, 1, 1], [], []>} : vector<2x10xf32>, vector<10x10xf32>, vector<2x10xf32> -> vector<2x10xf32>
    %c0_5 = arith.constant 0 : index
    %c0_6 = arith.constant 0 : index
    %4 = vector.load %arg5[%c0_5, %c0_6] : memref<10x10xf32, #tpu.memory_space<vmem>>, vector<10x10xf32>
    %cst_7 = arith.constant dense<0.000000e+00> : vector<2x10xf32>
    %5 = tpu.matmul %0, %4, %cst_7 {dimension_numbers = #tpu.dot_dimension_numbers<[1], [0], [0], [1], [0, 0, 1, 1], [], []>} : vector<2x10xf32>, vector<10x10xf32>, vector<2x10xf32> -> vector<2x10xf32>
    %6 = arith.addf %3, %5 : vector<2x10xf32>
    %c0_8 = arith.constant 0 : index
    %c0_9 = arith.constant 0 : index
    %7 = vector.load %arg3[%c0_8, %c0_9] : memref<2x1xf32, #tpu.memory_space<vmem>>, vector<2x1xf32>
    %c0_10 = arith.constant 0 : index
    %c0_11 = arith.constant 0 : index
    %8 = vector.load %arg6[%c0_10, %c0_11] : memref<1x10xf32, #tpu.memory_space<vmem>>, vector<1x10xf32>
    %9 = vector.broadcast %7 : vector<2x1xf32> to vector<2x10xf32>
    %10 = vector.broadcast %8 : vector<1x10xf32> to vector<2x10xf32>
    %11 = arith.mulf %9, %10 : vector<2x10xf32>
    %12 = arith.addf %6, %11 : vector<2x10xf32>
    %c0_12 = arith.constant 0 : index
    %c0_13 = arith.constant 0 : index
    %13 = vector.load %arg7[%c0_12, %c0_13] : memref<1x10xf32, #tpu.memory_space<vmem>>, vector<1x10xf32>
    %14 = vector.broadcast %13 : vector<1x10xf32> to vector<2x10xf32>
    %15 = arith.addf %12, %14 : vector<2x10xf32>
    %cst_14 = arith.constant 0.000000e+00 : f32
    %16 = vector.broadcast %cst_14 : f32 to vector<2x10xf32>
    %17 = arith.maximumf %15, %16 : vector<2x10xf32>
    %cst_15 = arith.constant 0.899999976 : f32
    %18 = vector.broadcast %cst_15 : f32 to vector<2x10xf32>
    %19 = arith.mulf %0, %18 : vector<2x10xf32>
    %cst_16 = arith.constant 1.000000e-01 : f32
    %20 = vector.broadcast %cst_16 : f32 to vector<2x10xf32>
    %21 = arith.mulf %20, %17 : vector<2x10xf32>
    %22 = arith.addf %19, %21 : vector<2x10xf32>
    %c0_17 = arith.constant 0 : index
    %c0_18 = arith.constant 0 : index
    %23 = vector.load %arg8[%c0_17, %c0_18] : memref<2x10xf32, #tpu.memory_space<vmem>>, vector<2x10xf32>
    tpu.vector_store %arg8[%c0_17, %c0_18], %22 {strides = array<i32>} : memref<2x10xf32, #tpu.memory_space<vmem>>, vector<2x10xf32>,
    return
  }
  func.func @transform_0(%arg0: i32) -> (i32, i32) {
    %c0_i32 = arith.constant 0 : i32
    %c0_i32_0 = arith.constant 0 : i32
    return %arg0, %c0_i32 : i32, i32
  }
  func.func @transform_1(%arg0: i32) -> (i32, i32) {
    %c0_i32 = arith.constant 0 : i32
    %c0_i32_0 = arith.constant 0 : i32
    return %arg0, %c0_i32 : i32, i32
  }
  func.func @transform_2(%arg0: i32) -> (i32, i32) {
    %c0_i32 = arith.constant 0 : i32
    %c0_i32_0 = arith.constant 0 : i32
    return %arg0, %c0_i32 : i32, i32
  }
  func.func @transform_3(%arg0: i32) -> (i32, i32) {
    %c0_i32 = arith.constant 0 : i32
    %c0_i32_0 = arith.constant 0 : i32
    %c0_i32_1 = arith.constant 0 : i32
    return %c0_i32, %c0_i32_0 : i32, i32
  }
  func.func @transform_4(%arg0: i32) -> (i32, i32) {
    %c0_i32 = arith.constant 0 : i32
    %c0_i32_0 = arith.constant 0 : i32
    %c0_i32_1 = arith.constant 0 : i32
    return %c0_i32, %c0_i32_0 : i32, i32
  }
  func.func @transform_5(%arg0: i32) -> (i32, i32) {
    %c0_i32 = arith.constant 0 : i32
    %c0_i32_0 = arith.constant 0 : i32
    %c0_i32_1 = arith.constant 0 : i32
    return %c0_i32, %c0_i32_0 : i32, i32
  }
  func.func @transform_6(%arg0: i32) -> (i32, i32) {
    %c0_i32 = arith.constant 0 : i32
    %c0_i32_0 = arith.constant 0 : i32
    %c0_i32_1 = arith.constant 0 : i32
    return %c0_i32, %c0_i32_0 : i32, i32
  }
  func.func @transform_7(%arg0: i32) -> (i32, i32) {
    %c0_i32 = arith.constant 0 : i32
    %c0_i32_0 = arith.constant 0 : i32
    return %arg0, %c0_i32 : i32, i32
  }
}

</mosaic_0001>

<bundles_post_ra>
// kernel: tpu_custom_call.1
= control target key start
LH: loop header
LB: loop body
LE: loop exit
PB: predicated region body
PF: predicated region fallthrough
CT: control target
= control target key end

     0   :  { %12 = vsyncpa [#allocation3], 0  ;;  %s433_s0 = inlined_call_operand.vmem [shape: f32[2,10], index: 0, kind: input, shape index: {}]   ;;  %s434_s1 = inlined_call_operand.vmem [shape: f32[2,10], index: 1, kind: input, shape index: {}]   ;;  %s435_s2 = inlined_call_operand.vmem [shape: f32[2,1], index: 2, kind: input, shape index: {}]   ;;  %s436_s3 = inlined_call_operand.hbm [shape: f32[10,10], index: 3, kind: input, shape index: {}]   ;;  %s437_s4 = inlined_call_operand.hbm [shape: f32[10,10], index: 4, kind: input, shape index: {}]   ;;  %s438_s5 = inlined_call_operand.vmem [shape: f32[1,10], index: 5, kind: input, shape index: {}]   ;;  %s439_s6 = inlined_call_operand.vmem [shape: f32[1,10], index: 6, kind: input, shape index: {}]   ;;  %s440_s7 = inlined_call_operand.hbm [shape: f32[2,10], index: 7, kind: output, shape index: {}]  }
   0x1   :  { %13 = vsyncpa [#allocation6], 0 }
   0x2   :  { %14 = vsyncpa [#allocation4], 0  ;;  %s361_s24 = smov [#allocation2]  }
   0x3   :  { %s26_s25 = sshll.u32 %s361_s24, 4  ;;  %s27_s25 = int_to_ptr.vmem [resolvable:$true] %s26_s25 }
   0x4   :  { %s303_s26 = scalar_lea.vmem %s27_s25, 256  ;;  %p308_p1 = scmp.lt.s32.totalorder %s27_s25, %s27_s25 }
   0x5   :  { %p304_p0 = scmp.ne.s32.totalorder %s27_s25, %s303_s26  ;;  %p309_p2 = scmp.lt.s32.totalorder %s303_s26, %s303_s26 }
   0x7   :  { %p310_p3 = por %p309_p2, %p308_p1 }
   0x9   :  { %p311_p4 = pnand %p310_p3, %p304_p0 }
   0xb   :  { %314 = shalt.err (!%p311_p4)
}
   0xc   :  { %s362_s27 = smov 128   ;;  %s363_s28 = smov 8  }
   0xd   :  { %32 = dma.hbm_to_vmem [thread:$0]  %s436_s3, 256, %s27_s25, [#allocation3], %s362_s27, %s362_s27, %s363_s28  }
   0xe   :  { %s364_s8 = smov [#allocation5]  }
   0xf   :  { %s38_s9 = sshll.u32 %s364_s8, 4  ;;  %s39_s9 = int_to_ptr.vmem [resolvable:$true] %s38_s9 }
  0x10   :  { %s323_s10 = scalar_lea.vmem %s39_s9, 256  ;;  %p328_p6 = scmp.lt.s32.totalorder %s39_s9, %s39_s9 }
  0x11   :  { %p324_p5 = scmp.ne.s32.totalorder %s39_s9, %s323_s10  ;;  %p329_p7 = scmp.lt.s32.totalorder %s323_s10, %s323_s10 }
  0x13   :  { %p330_p8 = por %p329_p7, %p328_p6 }
  0x15   :  { %p331_p9 = pnand %p330_p8, %p324_p5 }
  0x17   :  { %334 = shalt.err (!%p331_p9)
}
  0x18   :  { %44 = dma.hbm_to_vmem [thread:$0]  %s437_s4, 256, %s39_s9, [#allocation6], %s362_s27, %s362_s27, %s363_s28  }
  0x19   :  { %355 = dma.done.wait [#allocation3], 256  }
  0x1a   :  { %356 = vsyncadd [#allocation3], 4294967040 }
  0x1b   :  { %357 = dma.done.wait [#allocation6], 256  }
  0x1c   :  { %358 = vsyncadd [#allocation6], 4294967040  ;;  %v365_v0 = vmov 0.0   ;;  %vm366_vm0 = vmmov 0   ;;  %v367_v1 = vmov 0   ;;  %vm65_vm1 = vcmask 1041408  }
  0x1d   :  { %272 = vmatprep.subr.mxu0 %v365_v0  ;;  %279 = vmatprep.subr.mxu1 %v365_v0  ;;  %v60_v2 = vld [vmem:[#allocation5 + $0x8] sm:$0x3]  ;;  %v58_v3 = vld [vmem:[#allocation2 + $0x8] sm:$0x3]  ;;  %v59_v4 = vld [vmem:[#allocation5] sm:$0xff]  ;;  %vm61_vm2 = vcmask 80896  }
  0x1e   :  { %276 = vmatprep.mubr.msk.f32.mxu0 %vm366_vm0, %v365_v0  ;;  %283 = vmatprep.mubr.msk.f32.mxu1 %vm366_vm0, %v365_v0  ;;  %v57_v5 = vld [vmem:[#allocation2] sm:$0xff]  ;;  %vm242_vm3 = vcmask 74752  }
  0x1f   :  { %294 = vset.pattern.permute.xlu0 %v367_v1  ;;  %273 = vmatpush3.msk.msra.mxu0 %vm65_vm1, %v60_v2  ;;  %v55_v6 = vld [vmem:[%s434_s1] sm:$0x3] }
  0x20   :  { %280 = vmatpush3.msk.msra.mxu1 %vm65_vm1, %v58_v3  ;;  %v56_v7 = vld [vmem:[%s433_s0] sm:$0x3]  ;;  %274 = vmatprep.subr.mxu0 %v365_v0  ;;  %v239_v20 = vmul.f32 0.9, %v55_v6 }
  0x21   :  { %281 = vmatprep.subr.mxu1 %v365_v0  ;;  %v215_v8 = vld [vmem:[%s435_s2] sm:$0x3]  ;;  %275 = vmatpush3.msra.mxu0 %v59_v4  ;;  %s368_s2 = smov [#allocation7]  }
  0x22   :  { %282 = vmatpush3.msra.mxu1 %v57_v5  ;;  %277 = vmatmul.mubr.msk.f32.vlgmr.msra.gmra.mxu0 %vm61_vm2, %v55_v6  ;;  %v264_v9 = vld [vmem:[%s438_s5] ss:$0 sm:$0xff]  ;;  %s250_s19 = sshll.u32 %s368_s2, 4  ;;  %s251_s19 = int_to_ptr.vmem [resolvable:$true] %s250_s19 }
  0x23   :  { %284 = vmatmul.mubr.msk.f32.vlgmr.msra.gmra.mxu1 %vm61_vm2, %v56_v7  ;;  %219 = vperm.xlu0 %294, %v215_v8   ;;  %v265_v15 = vld [vmem:[%s439_s6] ss:$0 sm:$0xff]  ;;  %s335_s5 = scalar_lea.vmem %s251_s19, 32  ;;  %p340_p11 = scmp.lt.s32.totalorder %s251_s19, %s251_s19 }
  0x24   :  { %p336_p10 = scmp.ne.s32.totalorder %s251_s19, %s335_s5  ;;  %p341_p12 = scmp.lt.s32.totalorder %s335_s5, %s335_s5 }
  0x26   :  { %p342_p13 = por %p341_p12, %p340_p11 }
  0x28   :  { %p343_p0 = pnand %p342_p13, %p336_p10 }
  0x9e   :  { %v220_v10 = vpop.permute.xlu0 %219 }
  0x9f   :  { %v228_v11 = vmul.f32 %v264_v9, %v220_v10 }
  0xe2   :  { %v135_v12 = vpop.f32.mrf.mxu0 }
  0xe3   :  { %v211_v13 = vpop.f32.mrf.mxu1 }
  0xe4   :  { %v212_v14 = vadd.f32 %v211_v13, %v135_v12  ;;  %v278_v16 = vpop.f32.mrf.mxu0 }
  0xe5   :  { %v285_v17 = vpop.f32.mrf.mxu1 }
  0xe6   :  { %v229_v18 = vadd.f32 %v228_v11, %v212_v14 }
  0xe8   :  { %v237_v19 = vadd.f32 %v265_v15, %v229_v18 }
  0xea   :  { %v238_v21 = vmax.f32 %v237_v19, 0.0 }
  0xec   :  { %v240_v22 = vmul.f32 0.1, %v238_v21 }
  0xee   :  { %v241_v23 = vadd.f32 %v240_v22, %v239_v20 }
  0xf0   :  { %243 = vst.msk [vmem:[#allocation7] sm:$0x3] %vm242_vm3, %v241_v23 }
  0xf1   :  { %346 = shalt.err (!%p343_p0)
}
  0xf2   :  { %253 = dma.vmem_to_hbm [thread:$0]  %s251_s19, 32, %s440_s7, [#allocation4]  }
  0xf3   :  { %359 = dma.done.wait [#allocation4], 32  }
  0xf4   :  { %360 = vsyncadd [#allocation4], 4294967264 }
  0xf5   :  { %257 = vsyncpa [#allocation3], 1 }
  0xf6   :  { %258 = vsyncpa [#allocation6], 1 }
  0xf7   :  { %259 = vsyncpa [#allocation4], 1 }

</bundles_post_ra>
